<compile_context>
chip_gen: v6e
topology: v6e:2x2x1
jax: 0.10.0
libtpu: 0.0.40
codegen_flags: <defaults>
</compile_context>

<pallas_src>
import jax
import jax.numpy as jnp
from jax.experimental import pallas as pl
from jax.experimental.pallas import tpu as pltpu


def forward_loss_kernel(p_ref, wc_ref, bc_ref, pool_ref, wf_ref, bf_ref, y_ref,
                        loss_ref):
    """Fused forward + per-sample MSE loss for one batch tile.

    p_ref    : (9*Cin, TB*H*W) bf16   im2col patches, batch*spatial on the lane axis
    wc_ref   : (Cout, 9*Cin)   bf16   conv weight (tap-major rows match p_ref)
    bc_ref   : (Cout, 1)       f32    conv bias
    pool_ref : (TB*H*W, TB)    f32    block-diagonal average-pool matrix (entries 1/HW)
    wf_ref   : (Cout, K)       f32    fc weight (transposed torch layout)
    bf_ref   : (1, K)          f32    fc bias
    y_ref    : (TB, K)         f32    regression targets
    loss_ref : (TB, 1)         f32    per-sample MSE
    """
    # Conv3x3 as a single GEMM on the MXU (bf16 inputs, f32 accumulate).
    conv = jnp.dot(wc_ref[...], p_ref[...],
                   preferred_element_type=jnp.float32)          # (Cout, TB*H*W)
    conv = jnp.maximum(conv + bc_ref[...], 0.0)                 # lane-dense bias + ReLU

    # Global average pool == matmul with the (1/HW) block-diagonal matrix (MXU slot,
    # no relayout / reshape).
    pooled = jnp.dot(conv, pool_ref[...],
                     preferred_element_type=jnp.float32)        # (Cout, TB)

    # Linear head; the transpose touches only the tiny (Cout, TB) tile.
    logits = jnp.dot(pooled.T, wf_ref[...],
                     preferred_element_type=jnp.float32) + bf_ref[...]   # (TB, K)

    # Per-sample MSE (mean over K); the caller's `.mean()` reduces over the batch,
    # mirroring Network.forward returning per-sample loss.
    diff = logits - y_ref[...]
    loss_ref[...] = jnp.mean(diff * diff, axis=-1, keepdims=True)


def network_forward_loss(x_nchw, y, params):
    """Mirrors Network.forward(xs, ys): returns per-sample loss of shape (B, 1)."""
    conv_w, conv_b, fc_w, fc_b = params   # torch layouts: (Cout,Cin,3,3), (Cout,), (K,Cout), (K,)
    B, Cin, H, W = x_nchw.shape
    Cout = conv_w.shape[0]
    K = fc_w.shape[0]
    HW = H * W

    # Batch tile: whole batch when small, else a multiple of 8 (sublane constraint on the
    # (TB, K)/(TB, 1) blocks).  Re-derive TB per chip at real sizes: keep
    # 2 * (9*Cin * TB*HW * 2B) (double-buffered bf16 patches) + weights well under
    # ~32 MiB on v7x (64 MiB total VMEM), more headroom on v5e/v6e.
    TB = B if B <= 8 else 8
    assert B % TB == 0, "batch must be divisible by the batch tile"
    assert TB == B or (TB * HW) % 128 == 0, "lane tile must be 128-aligned"
    grid = (B // TB,)
    TBHW = TB * HW

    # ---- wrapper-side prep (plain XLA ops, fused; keeps per-tap slicing out of the kernel) ----
    # im2col: patches[(kh*3+kw)*Cin + ci, b*HW + i*W + j] = xpad[b, ci, i+kh, j+kw]
    xpad = jnp.pad(x_nchw, ((0, 0), (0, 0), (1, 1), (1, 1)))
    taps = [xpad[:, :, kh:kh + H, kw:kw + W] for kh in range(3) for kw in range(3)]
    patches = jnp.stack(taps, axis=0)                      # (9, B, Cin, H, W)
    patches = patches.transpose(0, 2, 1, 3, 4)             # (9, Cin, B, H, W)
    patches = patches.reshape(9 * Cin, B * HW).astype(jnp.bfloat16)

    # Conv weight -> (Cout, 9*Cin), tap-major to match the patch rows.
    wc = conv_w.transpose(0, 2, 3, 1).reshape(Cout, 9 * Cin).astype(jnp.bfloat16)
    bc = conv_b.reshape(Cout, 1).astype(jnp.float32)
    wf = fc_w.T.astype(jnp.float32)                        # (Cout, K)
    bf = fc_b.reshape(1, K).astype(jnp.float32)

    # Block-diagonal average-pool matrix: pool[t*HW + s, t] = 1/HW.
    pool_mat = jnp.kron(jnp.eye(TB, dtype=jnp.float32),
                        jnp.full((HW, 1), 1.0 / HW, jnp.float32))   # (TB*HW, TB)

    loss = pl.pallas_call(
        forward_loss_kernel,
        out_shape=jax.ShapeDtypeStruct((B, 1), jnp.float32),
        grid_spec=pltpu.PrefetchScalarGridSpec(
            num_scalar_prefetch=0,
            grid=grid,
            in_specs=[
                pl.BlockSpec((9 * Cin, TBHW), lambda i: (0, i)),  # patches (batch tile on lanes)
                pl.BlockSpec((Cout, 9 * Cin), lambda i: (0, 0)),  # conv weight  (broadcast)
                pl.BlockSpec((Cout, 1), lambda i: (0, 0)),        # conv bias    (broadcast)
                pl.BlockSpec((TBHW, TB), lambda i: (0, 0)),       # pool matrix  (broadcast)
                pl.BlockSpec((Cout, K), lambda i: (0, 0)),        # fc weight    (broadcast)
                pl.BlockSpec((1, K), lambda i: (0, 0)),           # fc bias      (broadcast)
                pl.BlockSpec((TB, K), lambda i: (i, 0)),          # targets
            ],
            out_specs=pl.BlockSpec((TB, 1), lambda i: (i, 0)),    # per-sample loss
        ),
        compiler_params=pltpu.CompilerParams(
            dimension_semantics=("parallel",),   # v7x: shard batch tiles across both TCs
        ),
    )(patches, wc, bc, pool_mat, wf, bf, y.astype(jnp.float32))
    return loss


def reference_loss(x_nchw, y, params):
    """Pure-JAX f32 reference (same math, no Pallas) for correctness checking."""
    conv_w, conv_b, fc_w, fc_b = params
    B, Cin, H, W = x_nchw.shape
    xpad = jnp.pad(x_nchw, ((0, 0), (0, 0), (1, 1), (1, 1)))
    conv = jnp.zeros((B, conv_w.shape[0], H, W), jnp.float32)
    for kh in range(3):
        for kw in range(3):
            conv = conv + jnp.einsum('bchw,oc->bohw',
                                     xpad[:, :, kh:kh + H, kw:kw + W],
                                     conv_w[:, :, kh, kw])
    conv = jnp.maximum(conv + conv_b[None, :, None, None], 0.0)
    pooled = conv.mean(axis=(2, 3))                          # (B, Cout)
    logits = pooled @ fc_w.T + fc_b[None, :]
    return jnp.mean((logits - y) ** 2, axis=-1, keepdims=True)


def init_params(key, cin=4, cout=8, k=10):
    """Deterministic stand-in parameters in PyTorch layouts."""
    k1, k2, k3, k4 = jax.random.split(key, 4)
    conv_w = jax.random.normal(k1, (cout, cin, 3, 3), jnp.float32) * 0.1
    conv_b = jax.random.normal(k2, (cout,), jnp.float32) * 0.01
    fc_w = jax.random.normal(k3, (k, cout), jnp.float32) * 0.1
    fc_b = jax.random.normal(k4, (k,), jnp.float32) * 0.01
    return conv_w, conv_b, fc_w, fc_b


if __name__ == "__main__":
    B, C, H, W, K = 2, 4, 16, 16, 10
    key = jax.random.PRNGKey(0)
    kx, ky, kp = jax.random.split(key, 3)

    x = jax.random.normal(kx, (B, C, H, W), jnp.float32)   # xs (NCHW, torch convention)
    y = jax.random.normal(ky, (B, K), jnp.float32)         # ys (regression targets)
    params = init_params(kp, cin=C, cout=8, k=K)

    fwd = jax.jit(network_forward_loss)
    per_sample_loss = fwd(x, y, params)                    # Network.forward(xs, ys)
    mean_loss = per_sample_loss.mean()                     # Network.train_step's loss.mean()
    jax.block_until_ready(mean_loss)

    ref = reference_loss(x, y, params)
    assert per_sample_loss.shape == (B, 1)
    assert bool(jnp.isfinite(mean_loss))
    # bf16 MXU inputs -> small tolerance against the pure-f32 reference.
    assert jnp.allclose(per_sample_loss, ref, rtol=5e-2, atol=5e-2), (per_sample_loss, ref)
    print("KERNEL_OK")
</pallas_src>

<mosaic_0001>
module attributes {stable_mosaic.version = 11 : i64} {
  func.func @forward_loss_kernel(%arg0: i32, %arg1: memref<36x512xbf16, #tpu.memory_space<vmem>>, %arg2: memref<8x36xbf16, #tpu.memory_space<vmem>>, %arg3: memref<8x1xf32, #tpu.memory_space<vmem>>, %arg4: memref<512x2xf32, #tpu.memory_space<vmem>>, %arg5: memref<8x10xf32, #tpu.memory_space<vmem>>, %arg6: memref<1x10xf32, #tpu.memory_space<vmem>>, %arg7: memref<2x10xf32, #tpu.memory_space<vmem>>, %arg8: memref<2x1xf32, #tpu.memory_space<vmem>>) attributes {dimension_semantics = [#tpu.dimension_semantics<parallel>], iteration_bounds = array<i64: 1>, scalar_prefetch = 0 : i64, scratch_operands = 0 : i64, tpu.core_type = #tpu.core_type<tc>, window_params = [{transform_indices = @transform_0, window_bounds = array<i64: 36, 512>}, {pipeline_mode = #tpu.pipeline_mode<synchronous>, transform_indices = @transform_1, window_bounds = array<i64: 8, 36>}, {pipeline_mode = #tpu.pipeline_mode<synchronous>, transform_indices = @transform_2, window_bounds = array<i64: 8, 1>}, {pipeline_mode = #tpu.pipeline_mode<synchronous>, transform_indices = @transform_3, window_bounds = array<i64: 512, 2>}, {pipeline_mode = #tpu.pipeline_mode<synchronous>, transform_indices = @transform_4, window_bounds = array<i64: 8, 10>}, {pipeline_mode = #tpu.pipeline_mode<synchronous>, transform_indices = @transform_5, window_bounds = array<i64: 1, 10>}, {transform_indices = @transform_6, window_bounds = array<i64: 2, 10>}, {transform_indices = @transform_7, window_bounds = array<i64: 2, 1>}]} {
    %c0 = arith.constant 0 : index
    %c0_0 = arith.constant 0 : index
    %0 = vector.load %arg2[%c0, %c0_0] : memref<8x36xbf16, #tpu.memory_space<vmem>>, vector<8x36xbf16>
    %c0_1 = arith.constant 0 : index
    %c0_2 = arith.constant 0 : index
    %1 = vector.load %arg1[%c0_1, %c0_2] : memref<36x512xbf16, #tpu.memory_space<vmem>>, vector<36x512xbf16>
    %cst = arith.constant dense<0.000000e+00> : vector<8x512xf32>
    %2 = tpu.matmul %0, %1, %cst {dimension_numbers = #tpu.dot_dimension_numbers<[1], [0], [0], [1], [0, 0, 1, 1], [], []>} : vector<8x36xbf16>, vector<36x512xbf16>, vector<8x512xf32> -> vector<8x512xf32>
    %c0_3 = arith.constant 0 : index
    %c0_4 = arith.constant 0 : index
    %3 = vector.load %arg3[%c0_3, %c0_4] : memref<8x1xf32, #tpu.memory_space<vmem>>, vector<8x1xf32>
    %4 = vector.broadcast %3 : vector<8x1xf32> to vector<8x512xf32>
    %5 = arith.addf %2, %4 : vector<8x512xf32>
    %cst_5 = arith.constant 0.000000e+00 : f32
    %6 = vector.broadcast %cst_5 : f32 to vector<8x512xf32>
    %7 = arith.maximumf %5, %6 : vector<8x512xf32>
    %c0_6 = arith.constant 0 : index
    %c0_7 = arith.constant 0 : index
    %8 = vector.load %arg4[%c0_6, %c0_7] : memref<512x2xf32, #tpu.memory_space<vmem>>, vector<512x2xf32>
    %cst_8 = arith.constant dense<0.000000e+00> : vector<8x2xf32>
    %9 = tpu.matmul %7, %8, %cst_8 {dimension_numbers = #tpu.dot_dimension_numbers<[1], [0], [0], [1], [0, 0, 1, 1], [], []>} : vector<8x512xf32>, vector<512x2xf32>, vector<8x2xf32> -> vector<8x2xf32>
    %10 = tpu.transpose %9, [1, 0] : vector<8x2xf32> -> vector<2x8xf32>
    %c0_9 = arith.constant 0 : index
    %c0_10 = arith.constant 0 : index
    %11 = vector.load %arg5[%c0_9, %c0_10] : memref<8x10xf32, #tpu.memory_space<vmem>>, vector<8x10xf32>
    %cst_11 = arith.constant dense<0.000000e+00> : vector<2x10xf32>
    %12 = tpu.matmul %10, %11, %cst_11 {dimension_numbers = #tpu.dot_dimension_numbers<[1], [0], [0], [1], [0, 0, 1, 1], [], []>} : vector<2x8xf32>, vector<8x10xf32>, vector<2x10xf32> -> vector<2x10xf32>
    %c0_12 = arith.constant 0 : index
    %c0_13 = arith.constant 0 : index
    %13 = vector.load %arg6[%c0_12, %c0_13] : memref<1x10xf32, #tpu.memory_space<vmem>>, vector<1x10xf32>
    %14 = vector.broadcast %13 : vector<1x10xf32> to vector<2x10xf32>
    %15 = arith.addf %12, %14 : vector<2x10xf32>
    %c0_14 = arith.constant 0 : index
    %c0_15 = arith.constant 0 : index
    %16 = vector.load %arg7[%c0_14, %c0_15] : memref<2x10xf32, #tpu.memory_space<vmem>>, vector<2x10xf32>
    %17 = arith.subf %15, %16 : vector<2x10xf32>
    %18 = arith.mulf %17, %17 : vector<2x10xf32>
    %cst_16 = arith.constant dense<0.000000e+00> : vector<2xf32>
    %19 = vector.multi_reduction <add>, %18, %cst_16 [1] : vector<2x10xf32> to vector<2xf32>
    %20 = vector.shape_cast %19 : vector<2xf32> to vector<2x1xf32>
    %cst_17 = arith.constant 1.000000e+01 : f32
    %21 = vector.broadcast %cst_17 : f32 to vector<2x1xf32>
    %22 = arith.divf %20, %21 : vector<2x1xf32>
    %c0_18 = arith.constant 0 : index
    %c0_19 = arith.constant 0 : index
    %23 = vector.load %arg8[%c0_18, %c0_19] : memref<2x1xf32, #tpu.memory_space<vmem>>, vector<2x1xf32>
    tpu.vector_store %arg8[%c0_18, %c0_19], %22 {strides = array<i32>} : memref<2x1xf32, #tpu.memory_space<vmem>>, vector<2x1xf32>,
    return
  }
  func.func @transform_0(%arg0: i32) -> (i32, i32) {
    %c0_i32 = arith.constant 0 : i32
    %c0_i32_0 = arith.constant 0 : i32
    return %c0_i32, %arg0 : i32, i32
  }
  func.func @transform_1(%arg0: i32) -> (i32, i32) {
    %c0_i32 = arith.constant 0 : i32
    %c0_i32_0 = arith.constant 0 : i32
    %c0_i32_1 = arith.constant 0 : i32
    return %c0_i32, %c0_i32_0 : i32, i32
  }
  func.func @transform_2(%arg0: i32) -> (i32, i32) {
    %c0_i32 = arith.constant 0 : i32
    %c0_i32_0 = arith.constant 0 : i32
    %c0_i32_1 = arith.constant 0 : i32
    return %c0_i32, %c0_i32_0 : i32, i32
  }
  func.func @transform_3(%arg0: i32) -> (i32, i32) {
    %c0_i32 = arith.constant 0 : i32
    %c0_i32_0 = arith.constant 0 : i32
    %c0_i32_1 = arith.constant 0 : i32
    return %c0_i32, %c0_i32_0 : i32, i32
  }
  func.func @transform_4(%arg0: i32) -> (i32, i32) {
    %c0_i32 = arith.constant 0 : i32
    %c0_i32_0 = arith.constant 0 : i32
    %c0_i32_1 = arith.constant 0 : i32
    return %c0_i32, %c0_i32_0 : i32, i32
  }
  func.func @transform_5(%arg0: i32) -> (i32, i32) {
    %c0_i32 = arith.constant 0 : i32
    %c0_i32_0 = arith.constant 0 : i32
    %c0_i32_1 = arith.constant 0 : i32
    return %c0_i32, %c0_i32_0 : i32, i32
  }
  func.func @transform_6(%arg0: i32) -> (i32, i32) {
    %c0_i32 = arith.constant 0 : i32
    %c0_i32_0 = arith.constant 0 : i32
    return %arg0, %c0_i32 : i32, i32
  }
  func.func @transform_7(%arg0: i32) -> (i32, i32) {
    %c0_i32 = arith.constant 0 : i32
    %c0_i32_0 = arith.constant 0 : i32
    return %arg0, %c0_i32 : i32, i32
  }
}

</mosaic_0001>

<bundles_post_ra>
// kernel: network_forward_loss.1
= control target key start
LH: loop header
LB: loop body
LE: loop exit
PB: predicated region body
PF: predicated region fallthrough
CT: control target
= control target key end

     0   :  { %vm98_vm0 = vcmask 1041408   ;;  %v645_v2 = vmov 0   ;;  %vm94_vm1 = vcmask 293888   ;;  %vm647_vm2 = vmmov 0   ;;  %s928_s0 = inlined_call_operand.vmem [shape: bf16[36,512], index: 0, kind: input, shape index: {}]   ;;  %s929_s2 = inlined_call_operand.vmem [shape: f32[8,1], index: 2, kind: input, shape index: {}]   ;;  %s930_s3 = inlined_call_operand.vmem [shape: f32[512,2], index: 3, kind: input, shape index: {}]   ;;  %s931_s1 = inlined_call_operand.vmem [shape: bf16[8,36], index: 1, kind: input, shape index: {}]   ;;  %s932_s4 = inlined_call_operand.vmem [shape: f32[8,10], index: 4, kind: input, shape index: {}]   ;;  %s933_s5 = inlined_call_operand.vmem [shape: f32[1,10], index: 5, kind: input, shape index: {}]   ;;  %s934_s6 = inlined_call_operand.vmem [shape: f32[2,10], index: 6, kind: input, shape index: {}]   ;;  %s935_s7 = inlined_call_operand.vmem [shape: f32[2,1], index: 7, kind: output, shape index: {}]  }
   0x1   :  { %v36_v0 = vld [vmem:[%s928_s0 + $0x40] sm:$0x33]  ;;  %v37_v1 = vld [vmem:[%s928_s0 + $0x48] sm:$0x33]  ;;  %143 = vmatprep.mubr.bf16.mxu0 %v645_v2  ;;  %184 = vmatprep.mubr.bf16.mxu1 %v645_v2  ;;  %v228_v18 = vld [vmem:[%s930_s3 + $0xf8] sm:$0xff]  ;;  %vm441_vm3 = vcmask 64512  }
   0x2   :  { %v539_v3 = vcombine.high %v36_v0, %v36_v0  ;;  %v541_v4 = vcombine.high %v37_v1, %v37_v1  ;;  %v538_v5 = vcombine.low %v36_v0, %v36_v0  ;;  %v540_v6 = vcombine.low %v37_v1, %v37_v1  ;;  %v633_v7 = vld [vmem:[%s928_s0 + $0x24] ss:$16 sps:$4 sm:$0xff]   ;;  %628 = vset.pattern.permute.xlu0 %v645_v2  ;;  %v635_v8 = vld [vmem:[%s928_s0 + $0x2c] ss:$16 sps:$4 sm:$0xff]   ;;  %v637_v11 = vld [vmem:[%s928_s0 + $0x20] ss:$16 sps:$4 sm:$0xff]  }
   0x3   :  { %v638_v12 = vld [vmem:[%s928_s0 + $0x28] ss:$16 sps:$4 sm:$0xff]   ;;  %v639_v13 = vld [vmem:[%s928_s0 + $0x4] ss:$16 sps:$4 sm:$0xff]   ;;  %v641_v14 = vld [vmem:[%s928_s0 + $0xc] ss:$16 sps:$4 sm:$0xff]  }
   0x4   :  { %542 = vmatprep.subr.msk.bf16.mxu0 %vm98_vm0, %v539_v3  ;;  %544 = vmatprep.subr.msk.bf16.mxu1 %vm98_vm0, %v541_v4  ;;  %v100_v9 = vsel %vm98_vm0, %v538_v5, 0  ;;  %v106_v10 = vsel %vm98_vm0, %v540_v6, 0  ;;  %v38_v15 = vld [vmem:[%s929_s2] sm:$0xff]  ;;  %v644_v17 = vld [vmem:[%s928_s0 + $0x8] ss:$16 sps:$4 sm:$0xff]   ;;  %v227_v23 = vld [vmem:[%s930_s3 + $0xf0] sm:$0xff] }
   0x5   :  { %122 = vmatpush1.bf16.msra.mxu0 %v100_v9  ;;  %163 = vmatpush1.bf16.msra.mxu1 %v106_v10  ;;  %v643_v16 = vld [vmem:[%s928_s0] ss:$16 sps:$4 sm:$0xff]   ;;  %v260_v19 = vld [vmem:[%s930_s3 + $0x1f8] sm:$0xff]  ;;  %v226_v27 = vld [vmem:[%s930_s3 + $0xe8] sm:$0xff]  ;;  %vm518_vm4 = vcmask 74752   ;;  %vm524_vm5 = vcmask 1024  }
   0x6   :  { %123 = vmatprep.subr.bf16.mxu0 %v633_v7  ;;  %164 = vmatprep.subr.bf16.mxu1 %v635_v8  ;;  %v27_v20 = vld [vmem:[%s931_s1] sm:$0xf]  ;;  %v212_v21 = vld [vmem:[%s930_s3 + $0x78] sm:$0xff]  ;;  %v259_v24 = vld [vmem:[%s930_s3 + $0x1f0] sm:$0xff] }
   0x7   :  { %41 = vperm.xlu0 %628, %v38_v15   ;;  %v244_v22 = vld [vmem:[%s930_s3 + $0x178] sm:$0xff]  ;;  %v211_v25 = vld [vmem:[%s930_s3 + $0x70] sm:$0xff]  ;;  %v258_v28 = vld [vmem:[%s930_s3 + $0x1e8] sm:$0xff] }
   0x8   :  { %v243_v26 = vld [vmem:[%s930_s3 + $0x170] sm:$0xff]  ;;  %v210_v29 = vld [vmem:[%s930_s3 + $0x68] sm:$0xff]  ;;  %v225_v31 = vld [vmem:[%s930_s3 + $0xe0] sm:$0xff] }
   0x9   :  { %124 = vmatpush1.bf16.msra.mxu0 %v637_v11  ;;  %165 = vmatpush1.bf16.msra.mxu1 %v638_v12  ;;  %v242_v30 = vld [vmem:[%s930_s3 + $0x168] sm:$0xff]  ;;  %v257_v32 = vld [vmem:[%s930_s3 + $0x1e0] sm:$0xff]  ;;  %v224_v35 = vld [vmem:[%s930_s3 + $0xd8] sm:$0xff] }
   0xa   :  { %125 = vmatprep.subr.bf16.mxu0 %v639_v13  ;;  %166 = vmatprep.subr.bf16.mxu1 %v641_v14  ;;  %v209_v33 = vld [vmem:[%s930_s3 + $0x60] sm:$0xff]  ;;  %v256_v36 = vld [vmem:[%s930_s3 + $0x1d8] sm:$0xff]  ;;  %v223_v39 = vld [vmem:[%s930_s3 + $0xd0] sm:$0xff] }
   0xb   :  { %v241_v34 = vld [vmem:[%s930_s3 + $0x160] sm:$0xff]  ;;  %v208_v37 = vld [vmem:[%s930_s3 + $0x58] sm:$0xff]  ;;  %v255_v40 = vld [vmem:[%s930_s3 + $0x1d0] sm:$0xff] }
   0xc   :  { %v240_v38 = vld [vmem:[%s930_s3 + $0x158] sm:$0xff]  ;;  %v207_v41 = vld [vmem:[%s930_s3 + $0x50] sm:$0xff]  ;;  %v222_v43 = vld [vmem:[%s930_s3 + $0xc8] sm:$0xff] }
   0xd   :  { %126 = vmatpush1.bf16.msra.mxu0 %v643_v16  ;;  %167 = vmatpush1.bf16.msra.mxu1 %v644_v17  ;;  %v239_v42 = vld [vmem:[%s930_s3 + $0x150] sm:$0xff]  ;;  %v254_v44 = vld [vmem:[%s930_s3 + $0x1c8] sm:$0xff]  ;;  %v221_v47 = vld [vmem:[%s930_s3 + $0xc0] sm:$0xff] }
   0xe   :  { %548 = vmatprep.subr.mxu0 %v228_v18  ;;  %583 = vmatprep.subr.mxu1 %v260_v19  ;;  %v206_v45 = vld [vmem:[%s930_s3 + $0x48] sm:$0xff]  ;;  %v253_v48 = vld [vmem:[%s930_s3 + $0x1c0] sm:$0xff]  ;;  %v220_v51 = vld [vmem:[%s930_s3 + $0xb8] sm:$0xff] }
   0xf   :  { %v238_v46 = vld [vmem:[%s930_s3 + $0x148] sm:$0xff]  ;;  %v205_v49 = vld [vmem:[%s930_s3 + $0x40] sm:$0xff]  ;;  %v252_v52 = vld [vmem:[%s930_s3 + $0x1b8] sm:$0xff] }
  0x10   :  { %543 = vmatmul.mubr.msk.bf16.vlgmr.msra.gmra.mxu0 %vm94_vm1, %v27_v20  ;;  %545 = vmatmul.mubr.msk.bf16.vlgmr.msra.gmra.mxu1 %vm94_vm1, %v27_v20  ;;  %v237_v50 = vld [vmem:[%s930_s3 + $0x140] sm:$0xff]  ;;  %v204_v53 = vld [vmem:[%s930_s3 + $0x38] sm:$0xff]  ;;  %v219_v55 = vld [vmem:[%s930_s3 + $0xb0] sm:$0xff] }
  0x11   :  { %549 = vmatpush3.msra.mxu0 %v212_v21  ;;  %584 = vmatpush3.msra.mxu1 %v244_v22  ;;  %v236_v54 = vld [vmem:[%s930_s3 + $0x138] sm:$0xff]  ;;  %v251_v56 = vld [vmem:[%s930_s3 + $0x1b0] sm:$0xff]  ;;  %v218_v59 = vld [vmem:[%s930_s3 + $0xa8] sm:$0xff] }
  0x12   :  { %550 = vmatprep.subr.mxu0 %v227_v23  ;;  %585 = vmatprep.subr.mxu1 %v259_v24  ;;  %v203_v57 = vld [vmem:[%s930_s3 + $0x30] sm:$0xff]  ;;  %v250_v60 = vld [vmem:[%s930_s3 + $0x1a8] sm:$0xff]  ;;  %v217_v63 = vld [vmem:[%s930_s3 + $0xa0] sm:$0xff] }
  0x13   :  { %551 = vmatpush3.msra.mxu0 %v211_v25  ;;  %586 = vmatpush3.msra.mxu1 %v243_v26  ;;  %v235_v58 = vld [vmem:[%s930_s3 + $0x130] sm:$0xff]  ;;  %v202_v61 = vld [vmem:[%s930_s3 + $0x28] sm:$0xff]  ;;  %v249_v0 = vld [vmem:[%s930_s3 + $0x1a0] sm:$0xff] }
  0x14   :  { %552 = vmatprep.subr.mxu0 %v226_v27  ;;  %587 = vmatprep.subr.mxu1 %v258_v28  ;;  %v234_v62 = vld [vmem:[%s930_s3 + $0x128] sm:$0xff]  ;;  %v201_v1 = vld [vmem:[%s930_s3 + $0x20] sm:$0xff]  ;;  %v216_v3 = vld [vmem:[%s930_s3 + $0x98] sm:$0xff] }
  0x15   :  { %553 = vmatpush3.msra.mxu0 %v210_v29  ;;  %588 = vmatpush3.msra.mxu1 %v242_v30  ;;  %v233_v2 = vld [vmem:[%s930_s3 + $0x120] sm:$0xff]  ;;  %v248_v4 = vld [vmem:[%s930_s3 + $0x198] sm:$0xff]  ;;  %v215_v7 = vld [vmem:[%s930_s3 + $0x90] sm:$0xff] }
  0x16   :  { %554 = vmatprep.subr.mxu0 %v225_v31  ;;  %589 = vmatprep.subr.mxu1 %v257_v32  ;;  %v200_v5 = vld [vmem:[%s930_s3 + $0x18] sm:$0xff]  ;;  %v247_v8 = vld [vmem:[%s930_s3 + $0x190] sm:$0xff]  ;;  %v214_v11 = vld [vmem:[%s930_s3 + $0x88] sm:$0xff] }
  0x17   :  { %555 = vmatpush3.msra.mxu0 %v209_v33  ;;  %590 = vmatpush3.msra.mxu1 %v241_v34  ;;  %v232_v6 = vld [vmem:[%s930_s3 + $0x118] sm:$0xff]  ;;  %v199_v9 = vld [vmem:[%s930_s3 + $0x10] sm:$0xff]  ;;  %v246_v12 = vld [vmem:[%s930_s3 + $0x188] sm:$0xff] }
  0x18   :  { %556 = vmatprep.subr.mxu0 %v224_v35  ;;  %591 = vmatprep.subr.mxu1 %v256_v36  ;;  %v231_v10 = vld [vmem:[%s930_s3 + $0x110] sm:$0xff]  ;;  %v198_v13 = vld [vmem:[%s930_s3 + $0x8] sm:$0xff]  ;;  %v213_v15 = vld [vmem:[%s930_s3 + $0x80] sm:$0xff]  ;;  %v646_v36 = vmov 0.0  }
  0x19   :  { %557 = vmatpush3.msra.mxu0 %v208_v37  ;;  %592 = vmatpush3.msra.mxu1 %v240_v38  ;;  %v230_v14 = vld [vmem:[%s930_s3 + $0x108] sm:$0xff]  ;;  %v245_v16 = vld [vmem:[%s930_s3 + $0x180] sm:$0xff] }
  0x1a   :  { %558 = vmatprep.subr.mxu0 %v223_v39  ;;  %593 = vmatprep.subr.mxu1 %v255_v40  ;;  %v197_v17 = vld [vmem:[%s930_s3] sm:$0xff] }
  0x1b   :  { %559 = vmatpush3.msra.mxu0 %v207_v41  ;;  %594 = vmatpush3.msra.mxu1 %v239_v42  ;;  %v229_v18 = vld [vmem:[%s930_s3 + $0x100] sm:$0xff] }
  0x1c   :  { %560 = vmatprep.subr.mxu0 %v222_v43  ;;  %595 = vmatprep.subr.mxu1 %v254_v44  ;;  %v433_v37 = vld [vmem:[%s932_s4] sm:$0xff] }
  0x1d   :  { %561 = vmatpush3.msra.mxu0 %v206_v45  ;;  %596 = vmatpush3.msra.mxu1 %v238_v46  ;;  %v546_v46 = vld [vmem:[%s933_s5] ss:$0 sm:$0xff] }
  0x1e   :  { %562 = vmatprep.subr.mxu0 %v221_v47  ;;  %597 = vmatprep.subr.mxu1 %v253_v48  ;;  %v515_v48 = vld [vmem:[%s934_s6] sm:$0x3] }
  0x1f   :  { %563 = vmatpush3.msra.mxu0 %v205_v49  ;;  %598 = vmatpush3.msra.mxu1 %v237_v50 }
  0x20   :  { %564 = vmatprep.subr.mxu0 %v220_v51  ;;  %599 = vmatprep.subr.mxu1 %v252_v52 }
  0x21   :  { %565 = vmatpush3.msra.mxu0 %v204_v53  ;;  %600 = vmatpush3.msra.mxu1 %v236_v54 }
  0x22   :  { %566 = vmatprep.subr.mxu0 %v219_v55  ;;  %601 = vmatprep.subr.mxu1 %v251_v56 }
  0x23   :  { %567 = vmatpush3.msra.mxu0 %v203_v57  ;;  %602 = vmatpush3.msra.mxu1 %v235_v58 }
  0x24   :  { %568 = vmatprep.subr.mxu0 %v218_v59  ;;  %603 = vmatprep.subr.mxu1 %v250_v60 }
  0x25   :  { %569 = vmatpush3.msra.mxu0 %v202_v61  ;;  %604 = vmatpush3.msra.mxu1 %v234_v62 }
  0x26   :  { %570 = vmatprep.subr.mxu0 %v217_v63  ;;  %605 = vmatprep.subr.mxu1 %v249_v0 }
  0x27   :  { %571 = vmatpush3.msra.mxu0 %v201_v1  ;;  %606 = vmatpush3.msra.mxu1 %v233_v2 }
  0x28   :  { %572 = vmatprep.subr.mxu0 %v216_v3  ;;  %607 = vmatprep.subr.mxu1 %v248_v4 }
  0x29   :  { %573 = vmatpush3.msra.mxu0 %v200_v5  ;;  %608 = vmatpush3.msra.mxu1 %v232_v6 }
  0x2a   :  { %574 = vmatprep.subr.mxu0 %v215_v7  ;;  %609 = vmatprep.subr.mxu1 %v247_v8 }
  0x2b   :  { %575 = vmatpush3.msra.mxu0 %v199_v9  ;;  %610 = vmatpush3.msra.mxu1 %v231_v10 }
  0x2c   :  { %576 = vmatprep.subr.mxu0 %v214_v11  ;;  %611 = vmatprep.subr.mxu1 %v246_v12 }
  0x2d   :  { %577 = vmatpush3.msra.mxu0 %v198_v13  ;;  %612 = vmatpush3.msra.mxu1 %v230_v14 }
  0x2e   :  { %578 = vmatprep.subr.mxu0 %v213_v15  ;;  %613 = vmatprep.subr.mxu1 %v245_v16 }
  0x2f   :  { %579 = vmatpush3.msra.mxu0 %v197_v17  ;;  %614 = vmatpush3.msra.mxu1 %v229_v18 }
  0x30   :  { %620 = vmatprep.subr.mxu0 %v646_v36 }
  0x82   :  { %v42_v19 = vpop.permute.xlu0 %41 }
  0xd0   :  { %v145_v20 = vpop.f32.mrf.mxu0  ;;  %v186_v21 = vpop.f32.mrf.mxu1 }
  0xd1   :  { %v146_v22 = vadd.f32 %v145_v20, %v42_v19  ;;  %v187_v23 = vadd.f32 %v186_v21, %v42_v19 }
  0xd2   :  { %v147_v24 = vpop.f32.mrf.mxu0  ;;  %v188_v25 = vpop.f32.mrf.mxu1 }
  0xd3   :  { %v148_v26 = vadd.f32 %v147_v24, %v42_v19  ;;  %v189_v27 = vadd.f32 %v188_v25, %v42_v19  ;;  %v193_v32 = vmax.f32 %v146_v22, 0.0  ;;  %v195_v33 = vmax.f32 %v187_v23, 0.0 }
  0xd4   :  { %v149_v28 = vpop.f32.mrf.mxu0  ;;  %v190_v29 = vpop.f32.mrf.mxu1 }
  0xd5   :  { %v194_v30 = vmax.f32 %v148_v26, 0.0  ;;  %v196_v31 = vmax.f32 %v189_v27, 0.0 }
  0xd6   :  { %v150_v34 = vpop.f32.mrf.mxu0  ;;  %v191_v35 = vpop.f32.mrf.mxu1 }
  0xd7   :  { %325 = vmatprep.mubr.f32.mxu0 %v194_v30  ;;  %395 = vmatprep.mubr.f32.mxu1 %v196_v31 }
  0xd8   :  { %326 = vmatmul.mubr.f32.vlgmr.msra.gmra.mxu0 %v193_v32  ;;  %396 = vmatmul.mubr.f32.vlgmr.msra.gmra.mxu1 %v195_v33 }
  0xd9   :  { %622 = vmatprep.mubr.msk.f32.mxu0 %vm647_vm2, %v646_v36  ;;  %621 = vmatpush3.msra.mxu0 %v433_v37 }
 0x198   :  { %v580_v38 = vpop.f32.mrf.mxu0  ;;  %v615_v39 = vpop.f32.mrf.mxu1 }
 0x19a   :  { %v581_v40 = vpop.f32.mrf.mxu0  ;;  %v616_v41 = vpop.f32.mrf.mxu1 }
 0x19b   :  { %v582_v42 = vadd.f32 %v581_v40, %v580_v38  ;;  %v617_v43 = vadd.f32 %v616_v41, %v615_v39 }
 0x19d   :  { %v398_v44 = vadd.f32 %v617_v43, %v582_v42 }
 0x19f   :  { %401 = vxpose.xlu0.b32.start.end [1/1] (short) (narrow) %v398_v44, 8 }
 0x21b   :  { %v417_v45 = vpop.trf.xlu0 }
 0x21c   :  { %623 = vmatmul.mubr.msk.f32.vlgmr.msra.gmra.mxu0 %vm441_vm3, %v417_v45 }
 0x2dc   :  { %v511_v47 = vpop.f32.mrf.mxu0 }
 0x2dd   :  { %v512_v49 = vadd.f32 %v546_v46, %v511_v47 }
 0x2de   :  { %v624_v50 = vpop.f32.mrf.mxu0 }
 0x2df   :  { %v516_v51 = vsub.f32 %v512_v49, %v515_v48 }
 0x2e1   :  { %v517_v52 = vmul.f32 %v516_v51, %v516_v51 }
 0x2e3   :  { %v519_v53 = vsel %vm518_vm4, %v517_v52, 0.0 }
 0x2e4   :  { %520 = vadd.xlane.f32.xlu1 %v519_v53 }
 0x36d   :  { %v521_v54 = vpop.xlane.xlu1 %520 }
 0x36e   :  { %v523_v55 = vmul.f32 0.1, %v521_v54 }
 0x370   :  { %525 = vst.msk [vmem:[%s935_s7] sm:$0x3] %vm524_vm5, %v523_v55 }

</bundles_post_ra>
